<compile_context>
chip_gen: v6e
topology: v6e:2x2x1
jax: 0.10.0
libtpu: 0.0.40
codegen_flags: <defaults>
</compile_context>

<pallas_src>
import functools

import jax
import jax.numpy as jnp
import numpy as np
from jax.experimental import pallas as pl
from jax.experimental.pallas import tpu as pltpu


# ---------------------------------------------------------------------------
# Tile selection (generation-safe: one block stays well under v5e's 16 MiB
# scoped-VMEM default and v7x's 64 MiB physical VMEM, even double-buffered).
# ---------------------------------------------------------------------------

_BLOCK_BUDGET_BYTES = 4 << 20      # per-block budget (x2 for double buffering)
_VMEM_LIMIT_BYTES = 32 << 20       # explicit scoped-VMEM limit, safe on v5e/v6e/v7x


def _lane_tile(n, row_bytes, budget_bytes=_BLOCK_BUDGET_BYTES, max_tile=4096):
    """Tile for a lane-ish block dim of extent n: the full extent when
    n <= 128, otherwise a multiple of 128 capped by the VMEM budget."""
    if n <= 128:
        return int(n)
    by_budget = max(128, (budget_bytes // max(int(row_bytes), 1)) // 128 * 128)
    aligned_n = (n // 128) * 128
    return int(min(aligned_n, by_budget, max_tile))


# ---------------------------------------------------------------------------
# Pallas kernels
# ---------------------------------------------------------------------------

def _avg_lane_kernel(x_ref, o_ref):
    # x_ref: (Tt, B, C) block of the original (T, B, C) tensor.
    # Mean over C (the lane axis) in f32; the small (Tt, B) result is
    # transposed through the XLU and stored lane-dense as a (B, Tt) block.
    xb = x_ref[...].astype(jnp.float32)
    red = jnp.mean(xb, axis=-1)                 # (Tt, B)
    o_ref[...] = red.T.astype(o_ref.dtype)      # (B, Tt), lane-dense over T


def _avg_generic_kernel(x_ref, o_ref, *, avg_dim):
    # Fallback for non-default configs (reshape=False or avg_dim != 1).
    xb = x_ref[...].astype(jnp.float32)
    o_ref[...] = jnp.mean(xb, axis=avg_dim).astype(o_ref.dtype)


def _adaptive_kernel(w_ref, x_ref, o_ref):
    # w_ref: (S, T) f32 pooling matrix (grid-invariant, stays resident).
    # x_ref: (T, TN) lane tile of the flattened (T, B*C) input.
    # o_ref: (S, TN) lane-dense output tile; f32 accumulation on the MXU.
    o_ref[...] = jnp.dot(
        w_ref[...], x_ref[...].astype(jnp.float32),
        preferred_element_type=jnp.float32,
    ).astype(o_ref.dtype)


def _adaptive_pool_matrix(in_len, out_len):
    # Matches torch.nn.AdaptiveAvgPool1d bin boundaries:
    #   start = floor(i * L / S), end = ceil((i + 1) * L / S)
    # Kept in float32 regardless of input dtype (exact bin weights).
    w = np.zeros((out_len, in_len), dtype=np.float32)
    for s in range(out_len):
        start = (s * in_len) // out_len
        end = -(-((s + 1) * in_len) // out_len)
        w[s, start:end] = 1.0 / float(end - start)
    return jnp.asarray(w)


# ---------------------------------------------------------------------------
# Module wrapper
# ---------------------------------------------------------------------------

class InstanceMapper:
    def __init__(self, output_size, sequence_length=32, mode='avg',
                 avg_dim=1, reshape=True):
        self.mode = mode
        self.avg_dim = avg_dim
        self.reshape = reshape
        self.output_size = output_size
        self.sequence_length = sequence_length

    def get_output_size(self):
        if self.mode == 'avg':
            return 1
        if self.mode == 'identity':
            return self.sequence_length
        return self.output_size

    # -- mode='avg' -----------------------------------------------------------
    def _avg(self, x):
        if self.reshape and self.avg_dim == 1:
            # Optimized path: mean over channels of permuted (B, C, T) is a
            # lane reduction of the original (T, B, C) -- no wrapper transpose.
            T, B, C = x.shape
            tt = _lane_tile(T, row_bytes=B * C * x.dtype.itemsize)
            grid = (pl.cdiv(T, tt),)
            return pl.pallas_call(
                _avg_lane_kernel,
                grid=grid,
                in_specs=[pl.BlockSpec((tt, B, C), lambda i: (i, 0, 0))],
                out_specs=pl.BlockSpec((B, tt), lambda i: (0, i)),
                out_shape=jax.ShapeDtypeStruct((B, T), x.dtype),
                compiler_params=pltpu.CompilerParams(
                    dimension_semantics=("parallel",),
                    vmem_limit_bytes=_VMEM_LIMIT_BYTES,
                ),
            )(x)

        # Generic fallback for non-default configs (small shapes only).
        xp = jnp.transpose(x, (1, 2, 0)) if self.reshape else x
        out_shape = tuple(d for i, d in enumerate(xp.shape) if i != self.avg_dim)
        kernel = functools.partial(_avg_generic_kernel, avg_dim=self.avg_dim)
        return pl.pallas_call(
            kernel,
            grid=(1,),
            in_specs=[pl.BlockSpec(xp.shape, lambda _: (0,) * xp.ndim)],
            out_specs=pl.BlockSpec(out_shape, lambda _: (0,) * len(out_shape)),
            out_shape=jax.ShapeDtypeStruct(out_shape, x.dtype),
            compiler_params=pltpu.CompilerParams(
                dimension_semantics=("arbitrary",),
                vmem_limit_bytes=_VMEM_LIMIT_BYTES,
            ),
        )(xp)

    # -- mode='adaptive' -------------------------------------------------------
    def _adaptive(self, x):
        if self.reshape:
            x_tbc = x                                # already (T, B, C)
        else:
            x_tbc = jnp.transpose(x, (2, 0, 1))      # (B, C, T) -> (T, B, C)
        T, B, C = x_tbc.shape
        S = self.output_size
        N = B * C
        xf = x_tbc.reshape(T, N)                     # free reshape (merge trailing axes)
        w = _adaptive_pool_matrix(T, S)              # (S, T) float32

        tn = _lane_tile(N, row_bytes=T * xf.dtype.itemsize)
        grid = (pl.cdiv(N, tn),)
        out = pl.pallas_call(
            _adaptive_kernel,
            grid=grid,
            in_specs=[
                pl.BlockSpec((S, T), lambda i: (0, 0)),    # tiny pooling matrix, resident
                pl.BlockSpec((T, tn), lambda i: (0, i)),   # lane-tiled input slab
            ],
            out_specs=pl.BlockSpec((S, tn), lambda i: (0, i)),  # lane-dense output
            out_shape=jax.ShapeDtypeStruct((S, N), x.dtype),
            compiler_params=pltpu.CompilerParams(
                dimension_semantics=("parallel",),
                vmem_limit_bytes=_VMEM_LIMIT_BYTES,
            ),
        )(w, xf)
        # (S, B*C) -> (S*B, C) is exactly split(dim=2) + cat(dim=0) + squeeze.
        return jnp.squeeze(out.reshape(S * B, C, 1))

    # -- mode='identity' -------------------------------------------------------
    def _identity(self, x):
        # TODO(synk): identity mode is pure data movement (permute + split/cat
        # compose to a reshape of the original layout); no Pallas kernel needed.
        if self.reshape:
            T, B, C = x.shape
            return jnp.squeeze(x.reshape(T * B, C, 1))
        B, C, T = x.shape
        return jnp.squeeze(jnp.transpose(x, (2, 0, 1)).reshape(T * B, C, 1))

    def __call__(self, x):
        output = None
        if self.mode == 'avg':
            output = self._avg(x)
        if self.mode == 'adaptive':
            output = self._adaptive(x)
        if self.mode == 'identity':
            output = self._identity(x)
        return output


# ---------------------------------------------------------------------------
# Demo / correctness check
# ---------------------------------------------------------------------------

if __name__ == "__main__":
    key = jax.random.PRNGKey(0)
    T, B, C = 8, 2, 32          # seq=8, batch=2, channels=32
    OUT = 4
    x = jax.random.normal(key, (T, B, C), dtype=jnp.float32)

    x_perm = jnp.transpose(x, (1, 2, 0))  # reference (B, C, T) layout

    # mode='avg' (module default)
    out_avg = InstanceMapper(output_size=OUT, sequence_length=T, mode='avg')(x)
    jax.block_until_ready(out_avg)
    ref_avg = jnp.mean(x_perm, axis=1)
    assert out_avg.shape == (B, T), out_avg.shape
    np.testing.assert_allclose(np.asarray(out_avg), np.asarray(ref_avg),
                               rtol=1e-5, atol=1e-5)

    # mode='adaptive'  (T=8 -> S=4 means uniform windows of 2)
    out_ad = InstanceMapper(output_size=OUT, sequence_length=T, mode='adaptive')(x)
    jax.block_until_ready(out_ad)
    ref_pool = x_perm.reshape(B, C, OUT, T // OUT).mean(axis=-1)       # (B, C, S)
    ref_ad = jnp.transpose(ref_pool, (2, 0, 1)).reshape(OUT * B, C)
    assert out_ad.shape == (OUT * B, C), out_ad.shape
    np.testing.assert_allclose(np.asarray(out_ad), np.asarray(ref_ad),
                               rtol=1e-5, atol=1e-5)

    # mode='identity'
    out_id = InstanceMapper(output_size=OUT, sequence_length=T, mode='identity')(x)
    jax.block_until_ready(out_id)
    ref_id = jnp.transpose(x_perm, (2, 0, 1)).reshape(T * B, C)
    assert out_id.shape == (T * B, C), out_id.shape
    np.testing.assert_allclose(np.asarray(out_id), np.asarray(ref_id),
                               rtol=0, atol=0)

    print("KERNEL_OK")
</pallas_src>

<mosaic_0001>
module attributes {stable_mosaic.version = 11 : i64} {
  func.func @_avg_lane_kernel(%arg0: i32, %arg1: memref<8x2x32xf32, #tpu.memory_space<vmem>>, %arg2: memref<2x8xf32, #tpu.memory_space<vmem>>) attributes {dimension_semantics = [#tpu.dimension_semantics<parallel>], iteration_bounds = array<i64: 1>, scalar_prefetch = 0 : i64, scratch_operands = 0 : i64, tpu.core_type = #tpu.core_type<tc>, window_params = [{transform_indices = @transform_0, window_bounds = array<i64: 8, 2, 32>}, {transform_indices = @transform_1, window_bounds = array<i64: 2, 8>}]} {
    %c0 = arith.constant 0 : index
    %c0_0 = arith.constant 0 : index
    %c0_1 = arith.constant 0 : index
    %0 = vector.load %arg1[%c0, %c0_0, %c0_1] : memref<8x2x32xf32, #tpu.memory_space<vmem>>, vector<8x2x32xf32>
    %cst = arith.constant dense<0.000000e+00> : vector<8x2xf32>
    %1 = vector.multi_reduction <add>, %0, %cst [2] : vector<8x2x32xf32> to vector<8x2xf32>
    %cst_2 = arith.constant 3.200000e+01 : f32
    %2 = vector.broadcast %cst_2 : f32 to vector<8x2xf32>
    %3 = arith.divf %1, %2 : vector<8x2xf32>
    %4 = tpu.transpose %3, [1, 0] : vector<8x2xf32> -> vector<2x8xf32>
    %c0_3 = arith.constant 0 : index
    %c0_4 = arith.constant 0 : index
    %5 = vector.load %arg2[%c0_3, %c0_4] : memref<2x8xf32, #tpu.memory_space<vmem>>, vector<2x8xf32>
    tpu.vector_store %arg2[%c0_3, %c0_4], %4 {strides = array<i32>} : memref<2x8xf32, #tpu.memory_space<vmem>>, vector<2x8xf32>,
    return
  }
  func.func @transform_0(%arg0: i32) -> (i32, i32, i32) {
    %c0_i32 = arith.constant 0 : i32
    %c0_i32_0 = arith.constant 0 : i32
    %c0_i32_1 = arith.constant 0 : i32
    return %arg0, %c0_i32, %c0_i32_0 : i32, i32, i32
  }
  func.func @transform_1(%arg0: i32) -> (i32, i32) {
    %c0_i32 = arith.constant 0 : i32
    %c0_i32_0 = arith.constant 0 : i32
    return %c0_i32, %arg0 : i32, i32
  }
}

</mosaic_0001>

<bundles_post_ra>
// kernel: tpu_custom_call.1
= control target key start
LH: loop header
LB: loop body
LE: loop exit
PB: predicated region body
PF: predicated region fallthrough
CT: control target
= control target key end

     0   :  { %6 = vsyncpa [#allocation3], 0  ;;  %s248_s0 = inlined_call_operand.hbm [shape: f32[8,2,32], index: 0, kind: input, shape index: {}]   ;;  %s249_s1 = inlined_call_operand.hbm [shape: f32[2,8], index: 1, kind: output, shape index: {}]  }
   0x1   :  { %7 = vsyncpa [#allocation4], 0  ;;  %s220_s6 = smov [#allocation2]  }
   0x2   :  { %s13_s7 = sshll.u32 %s220_s6, 4  ;;  %s14_s7 = int_to_ptr.vmem [resolvable:$true] %s13_s7 }
   0x3   :  { %s184_s8 = scalar_lea.vmem %s14_s7, 256  ;;  %p189_p1 = scmp.lt.s32.totalorder %s14_s7, %s14_s7 }
   0x4   :  { %p185_p0 = scmp.ne.s32.totalorder %s14_s7, %s184_s8  ;;  %p190_p2 = scmp.lt.s32.totalorder %s184_s8, %s184_s8 }
   0x6   :  { %p191_p3 = por %p190_p2, %p189_p1 }
   0x8   :  { %p192_p4 = pnand %p191_p3, %p185_p0 }
   0xa   :  { %195 = shalt.err (!%p192_p4)
}
   0xb   :  { %s221_s9 = smov 32   ;;  %s222_s10 = smov 2  }
   0xc   :  { %19 = dma.hbm_to_vmem [thread:$0]  %s248_s0, 256, %s14_s7, [#allocation3], %s221_s9, %s221_s9, %s222_s10  }
   0xd   :  { %216 = dma.done.wait [#allocation3], 256  }
   0xe   :  { %217 = vsyncadd [#allocation3], 4294967040  ;;  %vm31_vm0 = vcmask 254976   ;;  %v23_v0 = vld [vmem:[#allocation2] sm:$0x3]  ;;  %v73_v16 = vlaneseq  ;;  %vm107_vm1 = vcmask 1041409  }
   0xf   :  { %v25_v1 = vld [vmem:[#allocation2 + $0x4] sm:$0x3]  ;;  %v24_v2 = vld [vmem:[#allocation2 + $0x2] sm:$0x3]  ;;  %v32_v3 = vsel %vm31_vm0, %v23_v0, 0.0  ;;  %vm109_vm2 = vcmask 1042434  }
  0x10   :  { %v38_v4 = vsel %vm31_vm0, %v25_v1, 0.0  ;;  %v26_v5 = vld [vmem:[#allocation2 + $0x6] sm:$0x3]  ;;  %33 = vadd.xlane.f32.xlu0 %v32_v3  ;;  %v35_v6 = vsel %vm31_vm0, %v24_v2, 0.0  ;;  %v27_v8 = vld [vmem:[#allocation2 + $0x8] sm:$0x3] }
  0x11   :  { %39 = vadd.xlane.f32.xlu1 %v38_v4  ;;  %v41_v7 = vsel %vm31_vm0, %v26_v5, 0.0  ;;  %v28_v9 = vld [vmem:[#allocation2 + $0xa] sm:$0x3]  ;;  %v44_v10 = vsel %vm31_vm0, %v27_v8, 0.0  ;;  %v29_v12 = vld [vmem:[#allocation2 + $0xc] sm:$0x3] }
  0x12   :  { %v47_v11 = vsel %vm31_vm0, %v28_v9, 0.0  ;;  %v30_v13 = vld [vmem:[#allocation2 + $0xe] sm:$0x3]  ;;  %v50_v14 = vsel %vm31_vm0, %v29_v12, 0.0  ;;  %v74_v17 = vand.u32 127, %v73_v16  ;;  %v76_v18 = vshrl.u32 %v73_v16, 7 }
  0x13   :  { %v53_v15 = vsel %vm31_vm0, %v30_v13, 0.0  ;;  %vm111_vm3 = vcmask 1043459   ;;  %vm113_vm4 = vcmask 1044484   ;;  %vm115_vm5 = vcmask 1045509   ;;  %s223_s0 = smov [#allocation5]  }
  0x14   :  { %36 = vadd.xlane.f32.xlu0 %v35_v6  ;;  %v77_v21 = vsub.s32 %v74_v17, %v76_v18  ;;  %vm117_vm6 = vcmask 1046534   ;;  %vm119_vm7 = vcmask 1047559   ;;  %s162_s13 = sshll.u32 %s223_s0, 4  ;;  %vm154_vm8 = vcmask 58368   ;;  %s163_s13 = int_to_ptr.vmem [resolvable:$true] %s162_s13 }
  0x15   :  { %42 = vadd.xlane.f32.xlu1 %v41_v7  ;;  %s196_s14 = scalar_lea.vmem %s163_s13, 32  ;;  %p201_p6 = scmp.lt.s32.totalorder %s163_s13, %s163_s13 }
  0x16   :  { %p197_p5 = scmp.ne.s32.totalorder %s163_s13, %s196_s14  ;;  %p202_p7 = scmp.lt.s32.totalorder %s196_s14, %s196_s14 }
  0x18   :  { %45 = vadd.xlane.f32.xlu0 %v44_v10  ;;  %p203_p8 = por %p202_p7, %p201_p6 }
  0x19   :  { %48 = vadd.xlane.f32.xlu1 %v47_v11 }
  0x1a   :  { %p204_p9 = pnand %p203_p8, %p197_p5 }
  0x1c   :  { %51 = vadd.xlane.f32.xlu0 %v50_v14 }
  0x1d   :  { %54 = vadd.xlane.f32.xlu1 %v53_v15 }
  0x99   :  { %v34_v19 = vpop.xlane.xlu0 %33 }
  0x9a   :  { %v40_v20 = vpop.xlane.xlu1 %39  ;;  %v57_v22 = vmul.f32 0.03125, %v34_v19 }
  0x9b   :  { %v59_v23 = vmul.f32 0.03125, %v40_v20 }
  0x9c   :  { %v78_v28 = vrot.slane %v57_v22, %v77_v21 }
  0x9d   :  { %v37_v24 = vpop.xlane.xlu0 %36  ;;  %v86_v31 = vrot.slane %v59_v23, %v77_v21 }
  0x9e   :  { %v43_v25 = vpop.xlane.xlu1 %42  ;;  %v58_v26 = vmul.f32 0.03125, %v37_v24 }
  0x9f   :  { %v60_v27 = vmul.f32 0.03125, %v43_v25 }
  0xa0   :  { %v82_v29 = vrot.slane %v58_v26, %v77_v21 }
  0xa1   :  { %v90_v30 = vrot.slane %v60_v27, %v77_v21  ;;  %v46_v32 = vpop.xlane.xlu0 %45 }
  0xa2   :  { %v49_v33 = vpop.xlane.xlu1 %48  ;;  %v108_v34 = vsel %vm107_vm1, %v82_v29, %v78_v28  ;;  %v61_v35 = vmul.f32 0.03125, %v46_v32 }
  0xa3   :  { %v62_v36 = vmul.f32 0.03125, %v49_v33  ;;  %v110_v37 = vsel %vm109_vm2, %v86_v31, %v108_v34 }
  0xa4   :  { %v112_v38 = vsel %vm111_vm3, %v90_v30, %v110_v37  ;;  %v94_v39 = vrot.slane %v61_v35, %v77_v21 }
  0xa5   :  { %v98_v40 = vrot.slane %v62_v36, %v77_v21  ;;  %v52_v41 = vpop.xlane.xlu0 %51 }
  0xa6   :  { %v55_v42 = vpop.xlane.xlu1 %54  ;;  %v114_v43 = vsel %vm113_vm4, %v94_v39, %v112_v38  ;;  %v63_v44 = vmul.f32 0.03125, %v52_v41 }
  0xa7   :  { %v64_v45 = vmul.f32 0.03125, %v55_v42  ;;  %v116_v48 = vsel %vm115_vm5, %v98_v40, %v114_v43 }
  0xa8   :  { %v102_v46 = vrot.slane %v63_v44, %v77_v21 }
  0xa9   :  { %v106_v47 = vrot.slane %v64_v45, %v77_v21 }
  0xaa   :  { %v118_v49 = vsel %vm117_vm6, %v102_v46, %v116_v48 }
  0xab   :  { %v120_v50 = vsel %vm119_vm7, %v106_v47, %v118_v49 }
  0xac   :  { %122 = vxpose.xlu0.b32.start.end [1/1] (short) (narrow) %v120_v50, 8 }
 0x128   :  { %v138_v51 = vpop.trf.xlu0 }
 0x129   :  { %155 = vst.msk [vmem:[#allocation5] sm:$0x3] %vm154_vm8, %v138_v51 }
 0x12a   :  { %207 = shalt.err (!%p204_p9)
}
 0x12b   :  { %165 = dma.vmem_to_hbm [thread:$0]  %s163_s13, 32, %s249_s1, [#allocation4]  }
 0x12c   :  { %218 = dma.done.wait [#allocation4], 32  }
 0x12d   :  { %219 = vsyncadd [#allocation4], 4294967264 }
 0x12e   :  { %169 = vsyncpa [#allocation3], 1 }
 0x12f   :  { %170 = vsyncpa [#allocation4], 1 }

</bundles_post_ra>
